<compile_context>
chip_gen: v7x
topology: tpu7x:2x2x1
jax: 0.10.0
libtpu: 0.0.40
codegen_flags: <defaults>
</compile_context>

<pallas_src>
import functools

import jax
import jax.numpy as jnp
from jax.experimental import pallas as pl
from jax.experimental.pallas import tpu as pltpu


def _round_up(n, m):
    return ((n + m - 1) // m) * m


def sequential_fc_kernel(x_ref, w1_ref, b1_ref, w2_ref, b2_ref, out1_ref, out2_ref):
    # fc1: out1 = x @ W1 + b1   (f32 accumulate on the MXU)
    x = x_ref[...]
    h1 = jnp.dot(x, w1_ref[...], preferred_element_type=jnp.float32) + b1_ref[...]
    out1_ref[...] = h1.astype(out1_ref.dtype)

    # fc2: out2 = relu(out1) @ W2 + b2  (ReLU taken from the f32 accumulator,
    # cast back to the compute dtype so the second matmul also runs bf16 on MXU)
    h = jnp.maximum(h1, 0.0).astype(w2_ref.dtype)
    out2 = jnp.dot(h, w2_ref[...], preferred_element_type=jnp.float32) + b2_ref[...]
    out2_ref[...] = out2.astype(out2_ref.dtype)


@functools.partial(jax.jit, static_argnames=("compute_dtype", "block_b"))
def sequential_fc(x, w1, b1, w2, b2, *, compute_dtype=jnp.bfloat16, block_b=256):
    """out1 = x @ W1 + b1 ; out2 = relu(out1) @ W2 + b2.  Returns (out1, out2)."""
    B, in_dim = x.shape
    dim1 = w1.shape[1]
    dim2 = w2.shape[1]
    out_dtype = x.dtype

    itemsize = jnp.dtype(compute_dtype).itemsize
    row_align = 8 * (4 // itemsize)  # f32 -> 8 rows, bf16 -> 16 rows (sublane packing)

    # Pad feature dims to lane multiples (128) so all loads/stores are lane-dense
    # full vregs and the MXU sees full-width operands. Zero padding is exact
    # (padded K-contributions are 0; padded rows/cols are sliced off at the end).
    in_p = _round_up(in_dim, 128)
    d1_p = _round_up(dim1, 128)
    d2_p = _round_up(dim2, 128)

    # Row tile: up to block_b rows per grid step, aligned for the compute dtype.
    tile_b = min(block_b, _round_up(B, row_align))
    b_p = _round_up(B, tile_b)

    cd = compute_dtype
    xp = jnp.zeros((b_p, in_p), cd).at[:B, :in_dim].set(x.astype(cd))
    w1p = jnp.zeros((in_p, d1_p), cd).at[:in_dim, :dim1].set(w1.astype(cd))
    w2p = jnp.zeros((d1_p, d2_p), cd).at[:dim1, :dim2].set(w2.astype(cd))
    b1p = jnp.zeros((1, d1_p), jnp.float32).at[:, :dim1].set(b1.astype(jnp.float32))
    b2p = jnp.zeros((1, d2_p), jnp.float32).at[:, :dim2].set(b2.astype(jnp.float32))

    grid = (b_p // tile_b,)

    out1_p, out2_p = pl.pallas_call(
        sequential_fc_kernel,
        out_shape=(
            jax.ShapeDtypeStruct((b_p, d1_p), out_dtype),
            jax.ShapeDtypeStruct((b_p, d2_p), out_dtype),
        ),
        grid_spec=pltpu.PrefetchScalarGridSpec(
            num_scalar_prefetch=0,
            grid=grid,
            in_specs=[
                # activations: stream one row-tile per grid step
                pl.BlockSpec((tile_b, in_p), lambda i: (i, 0)),
                # weights / biases: constant block index -> resident across all tiles
                pl.BlockSpec((in_p, d1_p), lambda i: (0, 0)),
                pl.BlockSpec((1, d1_p), lambda i: (0, 0)),
                pl.BlockSpec((d1_p, d2_p), lambda i: (0, 0)),
                pl.BlockSpec((1, d2_p), lambda i: (0, 0)),
            ],
            out_specs=[
                pl.BlockSpec((tile_b, d1_p), lambda i: (i, 0)),
                pl.BlockSpec((tile_b, d2_p), lambda i: (i, 0)),
            ],
        ),
        compiler_params=pltpu.CompilerParams(
            # batch tiles are independent -> shard across the 2 TCs on v7x
            dimension_semantics=("parallel",),
            # explicit VMEM budget; headroom under v7x's 64 MiB physical VMEM
            vmem_limit_bytes=48 * 1024 * 1024,
        ),
    )(xp, w1p, b1p, w2p, b2p)

    # Strip padding back to the caller's logical shapes.
    return out1_p[:B, :dim1], out2_p[:B, :dim2]


def _init_linear(key, in_features, out_features, dtype=jnp.float32):
    # Mimic nn.Linear default init: U(-1/sqrt(in), 1/sqrt(in)) for W and b.
    k_w, k_b = jax.random.split(key)
    bound = 1.0 / jnp.sqrt(jnp.asarray(in_features, dtype))
    # PyTorch weight is (out, in); store transposed (in, out) for x @ W.
    w = jax.random.uniform(k_w, (in_features, out_features), dtype, -bound, bound)
    b = jax.random.uniform(k_b, (1, out_features), dtype, -bound, bound)
    return w, b


if __name__ == "__main__":
    B, in_dim, dim1, dim2 = 8, 32, 64, 16

    key = jax.random.PRNGKey(0)
    k_x, k_fc1, k_fc2 = jax.random.split(key, 3)

    x = jax.random.normal(k_x, (B, in_dim), jnp.float32)
    w1, b1 = _init_linear(k_fc1, in_dim, dim1)
    w2, b2 = _init_linear(k_fc2, dim1, dim2)

    # Reference in plain JAX (same math as the PyTorch module, f32 throughout).
    ref1 = x @ w1 + b1
    ref2 = jnp.maximum(ref1, 0.0) @ w2 + b2

    # 1) Exact-semantics path: f32 compute (matches nn.Linear numerics tightly).
    o1_f32, o2_f32 = sequential_fc(x, w1, b1, w2, b2, compute_dtype=jnp.float32)
    jax.block_until_ready((o1_f32, o2_f32))
    assert jnp.allclose(o1_f32, ref1, atol=1e-4, rtol=1e-4)
    assert jnp.allclose(o2_f32, ref2, atol=1e-4, rtol=1e-4)

    # 2) Fast path (default): bf16 MXU feed, f32 accumulation. Looser tolerance
    #    only reflects the bf16 rounding of inputs/weights, not kernel error.
    o1_bf, o2_bf = sequential_fc(x, w1, b1, w2, b2)
    jax.block_until_ready((o1_bf, o2_bf))
    assert jnp.allclose(o1_bf, ref1, atol=5e-2, rtol=5e-2)
    assert jnp.allclose(o2_bf, ref2, atol=5e-2, rtol=5e-2)

    print("KERNEL_OK")
</pallas_src>

<mosaic_0001>
module attributes {stable_mosaic.version = 11 : i64} {
  func.func @sequential_fc_kernel(%arg0: i32, %arg1: memref<8x128xf32, #tpu.memory_space<vmem>>, %arg2: memref<128x128xf32, #tpu.memory_space<vmem>>, %arg3: memref<1x128xf32, #tpu.memory_space<vmem>>, %arg4: memref<128x128xf32, #tpu.memory_space<vmem>>, %arg5: memref<1x128xf32, #tpu.memory_space<vmem>>, %arg6: memref<8x128xf32, #tpu.memory_space<vmem>>, %arg7: memref<8x128xf32, #tpu.memory_space<vmem>>) attributes {dimension_semantics = [#tpu.dimension_semantics<parallel>], iteration_bounds = array<i64: 1>, scalar_prefetch = 0 : i64, scratch_operands = 0 : i64, tpu.core_type = #tpu.core_type<tc>, window_params = [{transform_indices = @transform_0, window_bounds = array<i64: 8, 128>}, {pipeline_mode = #tpu.pipeline_mode<synchronous>, transform_indices = @transform_1, window_bounds = array<i64: 128, 128>}, {pipeline_mode = #tpu.pipeline_mode<synchronous>, transform_indices = @transform_2, window_bounds = array<i64: 1, 128>}, {pipeline_mode = #tpu.pipeline_mode<synchronous>, transform_indices = @transform_3, window_bounds = array<i64: 128, 128>}, {pipeline_mode = #tpu.pipeline_mode<synchronous>, transform_indices = @transform_4, window_bounds = array<i64: 1, 128>}, {transform_indices = @transform_5, window_bounds = array<i64: 8, 128>}, {transform_indices = @transform_6, window_bounds = array<i64: 8, 128>}]} {
    %c0 = arith.constant 0 : index
    %c0_0 = arith.constant 0 : index
    %0 = vector.load %arg1[%c0, %c0_0] : memref<8x128xf32, #tpu.memory_space<vmem>>, vector<8x128xf32>
    %c0_1 = arith.constant 0 : index
    %c0_2 = arith.constant 0 : index
    %1 = vector.load %arg2[%c0_1, %c0_2] : memref<128x128xf32, #tpu.memory_space<vmem>>, vector<128x128xf32>
    %cst = arith.constant dense<0.000000e+00> : vector<8x128xf32>
    %2 = tpu.matmul %0, %1, %cst {dimension_numbers = #tpu.dot_dimension_numbers<[1], [0], [0], [1], [0, 0, 1, 1], [], []>} : vector<8x128xf32>, vector<128x128xf32>, vector<8x128xf32> -> vector<8x128xf32>
    %c0_3 = arith.constant 0 : index
    %c0_4 = arith.constant 0 : index
    %3 = vector.load %arg3[%c0_3, %c0_4] : memref<1x128xf32, #tpu.memory_space<vmem>>, vector<1x128xf32>
    %4 = vector.broadcast %3 : vector<1x128xf32> to vector<8x128xf32>
    %5 = arith.addf %2, %4 : vector<8x128xf32>
    %c0_5 = arith.constant 0 : index
    %c0_6 = arith.constant 0 : index
    %6 = vector.load %arg6[%c0_5, %c0_6] : memref<8x128xf32, #tpu.memory_space<vmem>>, vector<8x128xf32>
    tpu.vector_store %arg6[%c0_5, %c0_6], %5 {strides = array<i32>} : memref<8x128xf32, #tpu.memory_space<vmem>>, vector<8x128xf32>,
    %cst_7 = arith.constant 0.000000e+00 : f32
    %7 = vector.broadcast %cst_7 : f32 to vector<8x128xf32>
    %8 = arith.maximumf %5, %7 : vector<8x128xf32>
    %c0_8 = arith.constant 0 : index
    %c0_9 = arith.constant 0 : index
    %9 = vector.load %arg4[%c0_8, %c0_9] : memref<128x128xf32, #tpu.memory_space<vmem>>, vector<128x128xf32>
    %cst_10 = arith.constant dense<0.000000e+00> : vector<8x128xf32>
    %10 = tpu.matmul %8, %9, %cst_10 {dimension_numbers = #tpu.dot_dimension_numbers<[1], [0], [0], [1], [0, 0, 1, 1], [], []>} : vector<8x128xf32>, vector<128x128xf32>, vector<8x128xf32> -> vector<8x128xf32>
    %c0_11 = arith.constant 0 : index
    %c0_12 = arith.constant 0 : index
    %11 = vector.load %arg5[%c0_11, %c0_12] : memref<1x128xf32, #tpu.memory_space<vmem>>, vector<1x128xf32>
    %12 = vector.broadcast %11 : vector<1x128xf32> to vector<8x128xf32>
    %13 = arith.addf %10, %12 : vector<8x128xf32>
    %c0_13 = arith.constant 0 : index
    %c0_14 = arith.constant 0 : index
    %14 = vector.load %arg7[%c0_13, %c0_14] : memref<8x128xf32, #tpu.memory_space<vmem>>, vector<8x128xf32>
    tpu.vector_store %arg7[%c0_13, %c0_14], %13 {strides = array<i32>} : memref<8x128xf32, #tpu.memory_space<vmem>>, vector<8x128xf32>,
    return
  }
  func.func @transform_0(%arg0: i32) -> (i32, i32) {
    %c0_i32 = arith.constant 0 : i32
    %c0_i32_0 = arith.constant 0 : i32
    return %arg0, %c0_i32 : i32, i32
  }
  func.func @transform_1(%arg0: i32) -> (i32, i32) {
    %c0_i32 = arith.constant 0 : i32
    %c0_i32_0 = arith.constant 0 : i32
    %c0_i32_1 = arith.constant 0 : i32
    return %c0_i32, %c0_i32_0 : i32, i32
  }
  func.func @transform_2(%arg0: i32) -> (i32, i32) {
    %c0_i32 = arith.constant 0 : i32
    %c0_i32_0 = arith.constant 0 : i32
    %c0_i32_1 = arith.constant 0 : i32
    return %c0_i32, %c0_i32_0 : i32, i32
  }
  func.func @transform_3(%arg0: i32) -> (i32, i32) {
    %c0_i32 = arith.constant 0 : i32
    %c0_i32_0 = arith.constant 0 : i32
    %c0_i32_1 = arith.constant 0 : i32
    return %c0_i32, %c0_i32_0 : i32, i32
  }
  func.func @transform_4(%arg0: i32) -> (i32, i32) {
    %c0_i32 = arith.constant 0 : i32
    %c0_i32_0 = arith.constant 0 : i32
    %c0_i32_1 = arith.constant 0 : i32
    return %c0_i32, %c0_i32_0 : i32, i32
  }
  func.func @transform_5(%arg0: i32) -> (i32, i32) {
    %c0_i32 = arith.constant 0 : i32
    %c0_i32_0 = arith.constant 0 : i32
    return %arg0, %c0_i32 : i32, i32
  }
  func.func @transform_6(%arg0: i32) -> (i32, i32) {
    %c0_i32 = arith.constant 0 : i32
    %c0_i32_0 = arith.constant 0 : i32
    return %arg0, %c0_i32 : i32, i32
  }
}

</mosaic_0001>

<bundles_post_ra>
// kernel: sequential_fc.1
= control target key start
LH: loop header
LB: loop body
LE: loop exit
PB: predicated region body
PF: predicated region fallthrough
CT: control target
= control target key end

     0   :  { %12 = vsyncpa [#allocation3], 0  ;;  %v449_v3 = vmov 0.0|0.0   ;;  %vm450_vm0 = vmmov 0   ;;  %v451_v6 = vmov 0.0   ;;  %s634_s0 = inlined_call_operand.vmem [shape: f32[8,128], index: 0, kind: input, shape index: {}]   ;;  %s635_s1 = inlined_call_operand.vmem [shape: f32[128,128], index: 1, kind: input, shape index: {}]   ;;  %s636_s2 = inlined_call_operand.vmem [shape: f32[1,128], index: 2, kind: input, shape index: {}]   ;;  %s637_s3 = inlined_call_operand.vmem [shape: f32[128,128], index: 3, kind: input, shape index: {}]   ;;  %s638_s4 = inlined_call_operand.vmem [shape: f32[1,128], index: 4, kind: input, shape index: {}]   ;;  %s639_s5 = inlined_call_operand.hbm [shape: f32[8,128], index: 5, kind: output, shape index: {0}]   ;;  %s640_s6 = inlined_call_operand.hbm [shape: f32[8,128], index: 6, kind: output, shape index: {1}]  }
   0x1   :  { %v25_v0 = vld [vmem:[%s635_s1] sm:$0xff]  ;;  %v26_v1 = vld [vmem:[%s635_s1 + $0x8] sm:$0xff]  ;;  %v27_v2 = vld [vmem:[%s635_s1 + $0x10] sm:$0xff]  ;;  %348 = vmatprep.subr.bf16.mxu0 %v449_v3  ;;  %310 = vmatprep.mubr.msk.f32.mxu0 %vm450_vm0, %v451_v6 }
   0x2   :  { %v349_v4 = vpack.c.bf16 %v26_v1, %v25_v0  ;;  %v28_v5 = vld [vmem:[%s635_s1 + $0x18] sm:$0xff]  ;;  %372 = vmatprep.subr.bf16.mxu1 %v449_v3  ;;  %345 = vmatprep.mubr.msk.f32.mxu1 %vm450_vm0, %v451_v6  ;;  %v29_v8 = vld [vmem:[%s635_s1 + $0x20] sm:$0xff]  ;;  %v30_v9 = vld [vmem:[%s635_s1 + $0x28] sm:$0xff] }
   0x3   :  { %v352_v7 = vpack.c.bf16 %v28_v5, %v27_v2  ;;  %v120_v10 = vld [vmem:[%s637_s3] sm:$0xff]  ;;  %v121_v11 = vld [vmem:[%s637_s3 + $0x8] sm:$0xff]  ;;  %v122_v12 = vld [vmem:[%s637_s3 + $0x10] sm:$0xff]  ;;  %v355_v14 = vpack.c.bf16 %v30_v9, %v29_v8 }
   0x4   :  { %350 = vmatpush3.bf16.msra.mxu0 %v349_v4  ;;  %v123_v13 = vld [vmem:[%s637_s3 + $0x18] sm:$0xff]  ;;  %v373_v15 = vpack.c.bf16 %v121_v11, %v120_v10  ;;  %v31_v16 = vld [vmem:[%s635_s1 + $0x30] sm:$0xff]  ;;  %v124_v19 = vld [vmem:[%s637_s3 + $0x20] sm:$0xff] }
   0x5   :  { %351 = vmatprep.subr.bf16.mxu0 %v449_v3  ;;  %v32_v17 = vld [vmem:[%s635_s1 + $0x38] sm:$0xff]  ;;  %v376_v18 = vpack.c.bf16 %v123_v13, %v122_v12  ;;  %v125_v20 = vld [vmem:[%s637_s3 + $0x28] sm:$0xff] }
   0x6   :  { %374 = vmatpush3.bf16.msra.mxu1 %v373_v15 }
   0x7   :  { %375 = vmatprep.subr.bf16.mxu1 %v449_v3 }
   0x8   :  { %353 = vmatpush3.bf16.msra.mxu0 %v352_v7 }
   0x9   :  { %354 = vmatprep.subr.bf16.mxu0 %v449_v3 }
   0xa   :  { %13 = vsyncpa [#allocation5], 0  ;;  %v358_v21 = vpack.c.bf16 %v32_v17, %v31_v16  ;;  %v33_v22 = vld [vmem:[%s635_s1 + $0x40] sm:$0xff]  ;;  %v34_v23 = vld [vmem:[%s635_s1 + $0x48] sm:$0xff]  ;;  %377 = vmatpush3.bf16.msra.mxu1 %v376_v18  ;;  %v379_v24 = vpack.c.bf16 %v125_v20, %v124_v19 }
   0xb   :  { %378 = vmatprep.subr.bf16.mxu1 %v449_v3  ;;  %v126_v25 = vld [vmem:[%s637_s3 + $0x30] sm:$0xff]  ;;  %v127_v26 = vld [vmem:[%s637_s3 + $0x38] sm:$0xff]  ;;  %v361_v27 = vpack.c.bf16 %v34_v23, %v33_v22  ;;  %v128_v31 = vld [vmem:[%s637_s3 + $0x40] sm:$0xff] }
   0xc   :  { %356 = vmatpush3.bf16.msra.mxu0 %v355_v14  ;;  %v35_v28 = vld [vmem:[%s635_s1 + $0x50] sm:$0xff]  ;;  %v36_v29 = vld [vmem:[%s635_s1 + $0x58] sm:$0xff]  ;;  %v382_v30 = vpack.c.bf16 %v127_v26, %v126_v25  ;;  %v129_v32 = vld [vmem:[%s637_s3 + $0x48] sm:$0xff] }
   0xd   :  { %357 = vmatprep.subr.bf16.mxu0 %v449_v3  ;;  %v364_v33 = vpack.c.bf16 %v36_v29, %v35_v28  ;;  %v37_v34 = vld [vmem:[%s635_s1 + $0x60] sm:$0xff]  ;;  %v38_v35 = vld [vmem:[%s635_s1 + $0x68] sm:$0xff]  ;;  %v385_v36 = vpack.c.bf16 %v129_v32, %v128_v31  ;;  %v130_v37 = vld [vmem:[%s637_s3 + $0x50] sm:$0xff] }
   0xe   :  { %380 = vmatpush3.bf16.msra.mxu1 %v379_v24  ;;  %v131_v38 = vld [vmem:[%s637_s3 + $0x58] sm:$0xff]  ;;  %v367_v39 = vpack.c.bf16 %v38_v35, %v37_v34  ;;  %v39_v40 = vld [vmem:[%s635_s1 + $0x70] sm:$0xff]  ;;  %v132_v43 = vld [vmem:[%s637_s3 + $0x60] sm:$0xff] }
   0xf   :  { %381 = vmatprep.subr.bf16.mxu1 %v449_v3  ;;  %v40_v41 = vld [vmem:[%s635_s1 + $0x78] sm:$0xff]  ;;  %v388_v42 = vpack.c.bf16 %v131_v38, %v130_v37  ;;  %v133_v44 = vld [vmem:[%s637_s3 + $0x68] sm:$0xff]  ;;  %v24_v47 = vld [vmem:[%s634_s0] sm:$0xff]  ;;  %s452_s0 = smov [#allocation2]  }
  0x10   :  { %359 = vmatpush3.bf16.msra.mxu0 %v358_v21  ;;  %v370_v45 = vpack.c.bf16 %v40_v41, %v39_v40  ;;  %v391_v46 = vpack.c.bf16 %v133_v44, %v132_v43  ;;  %v134_v48 = vld [vmem:[%s637_s3 + $0x70] sm:$0xff]  ;;  %v135_v49 = vld [vmem:[%s637_s3 + $0x78] sm:$0xff]  ;;  %v242_v51 = vld [vmem:[%s636_s2] ss:$0 sm:$0xff]  ;;  %s220_s16 = sshll.u32 %s452_s0, 4  ;;  %s221_s16 = int_to_ptr.vmem [resolvable:$true] %s220_s16 }
  0x11   :  { %360 = vmatprep.subr.bf16.mxu0 %v449_v3  ;;  %v394_v50 = vpack.c.bf16 %v135_v49, %v134_v48  ;;  %s401_s17 = scalar_lea.vmem %s221_s16, 128  ;;  %p406_p1 = scmp.lt.s32.totalorder %s221_s16, %s221_s16 }
  0x12   :  { %383 = vmatpush3.bf16.msra.mxu1 %v382_v30  ;;  %p402_p0 = scmp.ne.s32.totalorder %s221_s16, %s401_s17  ;;  %p407_p2 = scmp.lt.s32.totalorder %s401_s17, %s401_s17 }
  0x13   :  { %384 = vmatprep.subr.bf16.mxu1 %v449_v3 }
  0x14   :  { %362 = vmatpush3.bf16.msra.mxu0 %v361_v27  ;;  %p408_p3 = por %p407_p2, %p406_p1 }
  0x15   :  { %363 = vmatprep.subr.bf16.mxu0 %v449_v3 }
  0x16   :  { %386 = vmatpush3.bf16.msra.mxu1 %v385_v36  ;;  %p409_p4 = pnand %p408_p3, %p402_p0 }
  0x17   :  { %387 = vmatprep.subr.bf16.mxu1 %v449_v3 }
  0x18   :  { %365 = vmatpush3.bf16.msra.mxu0 %v364_v33 }
  0x19   :  { %366 = vmatprep.subr.bf16.mxu0 %v449_v3 }
  0x1a   :  { %389 = vmatpush3.bf16.msra.mxu1 %v388_v42 }
  0x1b   :  { %390 = vmatprep.subr.bf16.mxu1 %v449_v3 }
  0x1c   :  { %368 = vmatpush3.bf16.msra.mxu0 %v367_v39 }
  0x1d   :  { %369 = vmatprep.subr.bf16.mxu0 %v449_v3 }
  0x1e   :  { %392 = vmatpush3.bf16.msra.mxu1 %v391_v46 }
  0x1f   :  { %393 = vmatprep.subr.bf16.mxu1 %v449_v3 }
  0x20   :  { %371 = vmatpush3.bf16.msra.mxu0 %v370_v45 }
  0x22   :  { %395 = vmatpush3.bf16.msra.mxu1 %v394_v50 }
  0x23   :  { %311 = vmatmul.mubr.f32.vlgmr.msra.gmra.mrb[0].mxu0 %v24_v47 }
  0xf6   :  { %v114_v52 = vpop.f32.mrb[0].mxu0 }
  0xf7   :  { %v115_v53 = vadd.f32 %v242_v51, %v114_v52  ;;  %v312_v54 = vpop.f32.mrb[1].mxu0 }
  0xf9   :  { %v119_v55 = vmax.f32 %v115_v53, 0.0  ;;  %118 = vst [vmem:[#allocation2] sm:$0xff] %v115_v53 }
  0xfb   :  { %346 = vmatmul.mubr.f32.vlgmr.msra.gmra.mrb[0].mxu1 %v119_v55 }
  0xfc   :  { %412 = shalt.err (!%p409_p4)
}
  0xfd   :  { %s413_s2 = scalar_lea.hbm %s639_s5, 128 }
  0xfe   :  { %p414_p5 = scmp.ne.s32.totalorder %s639_s5, %s413_s2  ;;  %p417_p6 = scmp.lt.u32.totalorder %s413_s2, %s639_s5 }
 0x100   :  { %p419_p7 = pnand %p417_p6, %p414_p5 }
 0x102   :  { %422 = shalt.err (!%p419_p7)
}
 0x103   :  { %223 = dma.vmem_to_hbm [thread:$0]  %s221_s16, 128, %s639_s5, [#allocation3]   ;;  %v243_v56 = vld [vmem:[%s638_s4] ss:$0 sm:$0xff] }
 0x104   :  { %s453_s27 = smov [#allocation4]  }
 0x105   :  { %s230_s28 = sshll.u32 %s453_s27, 4  ;;  %s231_s28 = int_to_ptr.vmem [resolvable:$true] %s230_s28 }
 0x106   :  { %s423_s29 = scalar_lea.vmem %s231_s28, 128  ;;  %p428_p9 = scmp.lt.s32.totalorder %s231_s28, %s231_s28 }
 0x107   :  { %p424_p8 = scmp.ne.s32.totalorder %s231_s28, %s423_s29  ;;  %p429_p10 = scmp.lt.s32.totalorder %s423_s29, %s423_s29 }
 0x109   :  { %p430_p11 = por %p429_p10, %p428_p9 }
 0x10b   :  { %p431_p12 = pnand %p430_p11, %p424_p8 }
 0x1ce   :  { %v209_v57 = vpop.f32.mrb[0].mxu1 }
 0x1cf   :  { %v210_v58 = vadd.f32 %v243_v56, %v209_v57  ;;  %v347_v59 = vpop.f32.mrb[1].mxu1 }
 0x1d1   :  { %213 = vst [vmem:[#allocation4] sm:$0xff] %v210_v58 }
 0x1d2   :  { %434 = shalt.err (!%p431_p12)
}
 0x1d3   :  { %s435_s7 = scalar_lea.hbm %s640_s6, 128 }
 0x1d4   :  { %p436_p13 = scmp.ne.s32.totalorder %s640_s6, %s435_s7  ;;  %p439_p0 = scmp.lt.u32.totalorder %s435_s7, %s640_s6 }
 0x1d6   :  { %p441_p1 = pnand %p439_p0, %p436_p13 }
 0x1d8   :  { %444 = shalt.err (!%p441_p1)
}
 0x1d9   :  { %233 = dma.vmem_to_hbm [thread:$0]  %s231_s28, 128, %s640_s6, [#allocation5]  }
 0x1da   :  { %445 = dma.done.wait [#allocation3], 128  }
 0x1db   :  { %446 = vsyncadd [#allocation3], 4294967168 }
 0x1dc   :  { %447 = dma.done.wait [#allocation5], 128  }
 0x1dd   :  { %448 = vsyncadd [#allocation5], 4294967168 }
 0x1de   :  { %240 = vsyncpa [#allocation3], 1 }
 0x1df   :  { %241 = vsyncpa [#allocation5], 1 }

</bundles_post_ra>
